<compile_context>
chip_gen: v5e
topology: v5e:2x2
jax: 0.10.0
libtpu: 0.0.40
codegen_flags: <defaults>
</compile_context>

<pallas_src>
import functools

import jax
import jax.numpy as jnp
from jax.experimental import pallas as pl
from jax.experimental.pallas import tpu as pltpu

EPS = 1e-5
NEG_SLOPE = 0.2
LANES = 128


def _round_up(x, m):
    return (x + m - 1) // m * m


def _full_spec(shape):
    zeros = (0,) * len(shape)
    return pl.BlockSpec(shape, lambda i, _z=zeros: _z)


_COMPILER_PARAMS = pltpu.CompilerParams(
    dimension_semantics=("arbitrary",),
    vmem_limit_bytes=48 * 1024 * 1024,
)


# ---------------------------------------------------------------------------
# Kernels
# ---------------------------------------------------------------------------
def _conv1_bn_lrelu_t_kernel(w_ref, p_ref, g_ref, bt_ref, o_ref, *, m_true):
    """Transposed layer 1: (W1^T @ patches^T) -> BN(batch stats) -> LReLU -> bf16.

    w_ref : (16, 16)   bf16  rows=Cout, cols=K (di*4+dj), Cin=1
    p_ref : (16, Mp)   bf16  patches^T, columns >= m_true are zero padding
    g_ref : (16, 1)    f32   gamma
    bt_ref: (16, 1)    f32   beta
    o_ref : (16, Mp)   bf16  layer-1 activation (channels x positions)
    Conv bias omitted: cancelled exactly by training-mode BN mean subtraction.
    """
    y = jnp.dot(w_ref[...], p_ref[...], preferred_element_type=jnp.float32)
    inv_m = 1.0 / m_true
    mean = jnp.sum(y, axis=1, keepdims=True) * inv_m          # pad cols are 0
    meansq = jnp.sum(y * y, axis=1, keepdims=True) * inv_m
    var = jnp.maximum(meansq - mean * mean, 0.0)              # biased, clamped
    yn = (y - mean) * jax.lax.rsqrt(var + EPS) * g_ref[...] + bt_ref[...]
    o_ref[...] = jnp.maximum(yn, NEG_SLOPE * yn).astype(o_ref.dtype)


def _fused_l2_l3_kernel(p_ref, w2_ref, g_ref, bt_ref, w3_ref, b3_ref, o_ref,
                        *, m_true, n_batch, wo2):
    """Fused layer2 (conv+BN+LReLU) + layer3 (4x4 conv -> 1x1) kept in VMEM.

    p_ref : (M2p, 256)      bf16 patches, row order (ho2, wo2, n)
    w2_ref: (256, 32)       bf16
    g_ref, bt_ref: (1, 32)  f32 BN affine
    w3_ref: (512, 128)      bf16, rows ordered (di, dj, c); only col 0 real
    b3_ref: (1, 128)        f32 final conv bias (only col 0 real)
    o_ref : (n_batch, 128)  f32 (only col 0 real)
    """
    y = jnp.dot(p_ref[...], w2_ref[...], preferred_element_type=jnp.float32)
    inv_m = 1.0 / m_true
    mean = jnp.sum(y, axis=0, keepdims=True) * inv_m          # pad rows are 0
    meansq = jnp.sum(y * y, axis=0, keepdims=True) * inv_m
    var = jnp.maximum(meansq - mean * mean, 0.0)
    yn = (y - mean) * jax.lax.rsqrt(var + EPS) * g_ref[...] + bt_ref[...]
    h = jnp.maximum(yn, NEG_SLOPE * yn).astype(jnp.bfloat16)  # (M2p, 32)

    # Layer-3 conv (single 4x4 window at output (0,0)) as ONE matmul:
    # gather the 16 window row-blocks (contiguous n_batch rows each, thanks to
    # (ho2, wo2, n) row order) and concatenate along K -> (n_batch, 512).
    pieces = []
    for di in range(4):
        for dj in range(4):
            off = (di * wo2 + dj) * n_batch
            pieces.append(h[off:off + n_batch, :])
    lhs = jnp.concatenate(pieces, axis=1)                     # (n_batch, 512)
    out = jnp.dot(lhs, w3_ref[...], preferred_element_type=jnp.float32)
    o_ref[...] = out + b3_ref[...]


# ---------------------------------------------------------------------------
# pallas_call wrappers
# ---------------------------------------------------------------------------
def _call_layer1(w1t, patches_t, g1, bt1, m_true):
    cout, k = w1t.shape
    _, mp = patches_t.shape
    kern = functools.partial(_conv1_bn_lrelu_t_kernel, m_true=float(m_true))
    flops = 2 * cout * k * mp + 10 * cout * mp
    bytes_accessed = (w1t.size + patches_t.size + cout * mp) * 2 + (g1.size + bt1.size) * 4
    return pl.pallas_call(
        kern,
        out_shape=jax.ShapeDtypeStruct((cout, mp), jnp.bfloat16),
        grid=(1,),
        in_specs=[
            _full_spec((cout, k)),
            _full_spec((k, mp)),
            _full_spec((cout, 1)),
            _full_spec((cout, 1)),
        ],
        out_specs=_full_spec((cout, mp)),
        compiler_params=_COMPILER_PARAMS,
        cost_estimate=pl.CostEstimate(flops=int(flops), transcendentals=int(cout),
                                      bytes_accessed=int(bytes_accessed)),
    )(w1t, patches_t, g1, bt1)


def _call_layer23(patches, w2, g2, bt2, w3cat, b3, m_true, n_batch, wo2):
    mp, k = patches.shape
    kw2, c2 = w2.shape
    kw3, _ = w3cat.shape
    kern = functools.partial(_fused_l2_l3_kernel, m_true=float(m_true),
                             n_batch=int(n_batch), wo2=int(wo2))
    flops = 2 * mp * k * c2 + 2 * n_batch * kw3 * LANES + 10 * mp * c2
    bytes_accessed = (patches.size + w2.size + w3cat.size) * 2 + n_batch * LANES * 4
    return pl.pallas_call(
        kern,
        out_shape=jax.ShapeDtypeStruct((n_batch, LANES), jnp.float32),
        grid=(1,),
        in_specs=[
            _full_spec((mp, k)),
            _full_spec((kw2, c2)),
            _full_spec((1, c2)),
            _full_spec((1, c2)),
            _full_spec((kw3, LANES)),
            _full_spec((1, LANES)),
        ],
        out_specs=_full_spec((n_batch, LANES)),
        compiler_params=_COMPILER_PARAMS,
        cost_estimate=pl.CostEstimate(flops=int(flops), transcendentals=int(c2),
                                      bytes_accessed=int(bytes_accessed)),
    )(patches, w2, g2, bt2, w3cat, b3)


# ---------------------------------------------------------------------------
# XLA-side glue: im2col, weight layout / padding
# ---------------------------------------------------------------------------
def _im2col5(x_nhwc, k, s):
    """(N,H,W,C) -> (N,Ho,Wo,k*k,C), window index order (kh, kw)."""
    N, H, W, C = x_nhwc.shape
    Ho = (H - k) // s + 1
    Wo = (W - k) // s + 1
    cols = []
    for di in range(k):
        for dj in range(k):
            cols.append(x_nhwc[:, di:di + s * Ho:s, dj:dj + s * Wo:s, :])
    return jnp.stack(cols, axis=3), Ho, Wo


def _im2col_t_cin1(x_nhwc, k, s):
    """(N,H,W,1) -> (k*k, N*Ho*Wo) transposed patches, col order (n, ho, wo)."""
    N, H, W, _ = x_nhwc.shape
    Ho = (H - k) // s + 1
    Wo = (W - k) // s + 1
    rows = []
    for di in range(k):
        for dj in range(k):
            rows.append(x_nhwc[:, di:di + s * Ho:s, dj:dj + s * Wo:s, 0].reshape(N * Ho * Wo))
    return jnp.stack(rows, axis=0), Ho, Wo


def _weight_to_mat(w_oihw, pad_cols):
    """(Cout,Cin,kh,kw) -> (kh*kw*Cin, pad_cols) bf16, cols >= Cout zero."""
    Cout, Cin, kh, kw = w_oihw.shape
    m = jnp.transpose(w_oihw, (2, 3, 1, 0)).reshape(kh * kw * Cin, Cout)
    if pad_cols > Cout:
        m = jnp.pad(m, ((0, 0), (0, pad_cols - Cout)))
    return m.astype(jnp.bfloat16)


def _pad_vec(v, n):
    """(C,) -> (1, n) f32, zero-padded."""
    return jnp.pad(v.astype(jnp.float32), (0, n - v.shape[0])).reshape(1, n)


# ---------------------------------------------------------------------------
# Discriminator forward (MNIST branch)
# ---------------------------------------------------------------------------
def init_params(key, hidden_dim=16, img_chan=1):
    ks = jax.random.split(key, 3)

    def conv_init(k, cout, cin, ksz):
        fan_in = cin * ksz * ksz
        bound = 1.0 / jnp.sqrt(fan_in)
        kw, kb = jax.random.split(k)
        w = jax.random.uniform(kw, (cout, cin, ksz, ksz), jnp.float32, -bound, bound)
        b = jax.random.uniform(kb, (cout,), jnp.float32, -bound, bound)
        return w, b

    w1, b1 = conv_init(ks[0], hidden_dim, img_chan, 4)
    w2, b2 = conv_init(ks[1], hidden_dim * 2, hidden_dim, 4)
    w3, b3 = conv_init(ks[2], 1, hidden_dim * 2, 4)
    return {
        "w1": w1, "b1": b1,   # b1/b2 kept for parity; cancelled by BN -> unused
        "g1": jnp.ones((hidden_dim,), jnp.float32),
        "bt1": jnp.zeros((hidden_dim,), jnp.float32),
        "w2": w2, "b2": b2,
        "g2": jnp.ones((hidden_dim * 2,), jnp.float32),
        "bt2": jnp.zeros((hidden_dim * 2,), jnp.float32),
        "w3": w3, "b3": b3,
    }


def discriminator_forward(params, x_nchw):
    hidden_dim = params["w1"].shape[0]          # 16
    N = x_nchw.shape[0]
    # NCHW (PyTorch) -> NHWC
    x = jnp.transpose(x_nchw, (0, 2, 3, 1)).astype(jnp.float32)

    # ---- layer 1 (transposed): conv(1->16, k4 s2) + BN + LeakyReLU ----
    p1t, H1, W1 = _im2col_t_cin1(x, 4, 2)                # (16, N*13*13)
    M1 = N * H1 * W1
    M1p = _round_up(M1, LANES)                           # lane-dense columns
    p1t = jnp.pad(p1t, ((0, 0), (0, M1p - M1))).astype(jnp.bfloat16)
    w1t = params["w1"].reshape(hidden_dim, 16).astype(jnp.bfloat16)  # Cin=1
    h1t = _call_layer1(
        w1t, p1t,
        params["g1"].astype(jnp.float32).reshape(hidden_dim, 1),
        params["bt1"].astype(jnp.float32).reshape(hidden_dim, 1),
        M1)                                              # (16, M1p) bf16
    # back to NHWC for the layer-2 im2col (only the 16 true channels round-trip)
    h1 = jnp.transpose(h1t[:, :M1].reshape(hidden_dim, N, H1, W1), (1, 2, 3, 0))

    # ---- layers 2+3 fused: conv(16->32)+BN+LReLU + conv(32->1) ----
    p5b, H2, W2 = _im2col5(h1, 4, 2)                     # (N,5,5,16,16) bf16
    assert (H2 - 4) // 2 + 1 == 1 and (W2 - 4) // 2 + 1 == 1
    M2 = N * H2 * W2
    K2 = 16 * hidden_dim
    # row order (ho2, wo2, n) so every layer-3 window position is one
    # contiguous N-row block inside the kernel (enables single-matmul layer 3).
    patches2 = jnp.transpose(p5b, (1, 2, 0, 3, 4)).reshape(M2, K2)
    M2p = _round_up(M2, 16)
    patches2 = jnp.pad(patches2, ((0, M2p - M2), (0, 0))).astype(jnp.bfloat16)
    out = _call_layer23(
        patches2,
        _weight_to_mat(params["w2"], hidden_dim * 2),    # (256, 32) — no Cin pad
        params["g2"].astype(jnp.float32).reshape(1, hidden_dim * 2),
        params["bt2"].astype(jnp.float32).reshape(1, hidden_dim * 2),
        _weight_to_mat(params["w3"], LANES),             # (512, 128), col 0 real
        _pad_vec(params["b3"], LANES),
        M2, N, W2)
    return out[:, :1]                                    # predictions.view(N, -1)


if __name__ == "__main__":
    key = jax.random.PRNGKey(0)
    k_param, k_x = jax.random.split(key)
    params = init_params(k_param)
    # MNIST-shaped input: batch=2, 1 channel, 28x28 (NCHW like the PyTorch module)
    x = jax.random.normal(k_x, (2, 1, 28, 28), dtype=jnp.float32)

    fwd = jax.jit(discriminator_forward)
    out = jax.block_until_ready(fwd(params, x))
    assert out.shape == (2, 1), out.shape
    assert bool(jnp.all(jnp.isfinite(out)))
    print("KERNEL_OK")
</pallas_src>

<mosaic_0001>
module attributes {stable_mosaic.version = 11 : i64} {
  func.func @_conv1_bn_lrelu_t_kernel(%arg0: i32, %arg1: memref<16x16xbf16, #tpu.memory_space<vmem>>, %arg2: memref<16x384xbf16, #tpu.memory_space<vmem>>, %arg3: memref<16x1xf32, #tpu.memory_space<vmem>>, %arg4: memref<16x1xf32, #tpu.memory_space<vmem>>, %arg5: memref<16x384xbf16, #tpu.memory_space<vmem>>) attributes {dimension_semantics = [#tpu.dimension_semantics<arbitrary>], iteration_bounds = array<i64: 1>, scalar_prefetch = 0 : i64, scratch_operands = 0 : i64, tpu.core_type = #tpu.core_type<tc>, window_params = [{pipeline_mode = #tpu.pipeline_mode<synchronous>, transform_indices = @transform_0, window_bounds = array<i64: 16, 16>}, {pipeline_mode = #tpu.pipeline_mode<synchronous>, transform_indices = @transform_1, window_bounds = array<i64: 16, 384>}, {pipeline_mode = #tpu.pipeline_mode<synchronous>, transform_indices = @transform_2, window_bounds = array<i64: 16, 1>}, {pipeline_mode = #tpu.pipeline_mode<synchronous>, transform_indices = @transform_3, window_bounds = array<i64: 16, 1>}, {pipeline_mode = #tpu.pipeline_mode<synchronous>, transform_indices = @transform_4, window_bounds = array<i64: 16, 384>}]} {
    %c0 = arith.constant 0 : index
    %c0_0 = arith.constant 0 : index
    %0 = vector.load %arg1[%c0, %c0_0] : memref<16x16xbf16, #tpu.memory_space<vmem>>, vector<16x16xbf16>
    %c0_1 = arith.constant 0 : index
    %c0_2 = arith.constant 0 : index
    %1 = vector.load %arg2[%c0_1, %c0_2] : memref<16x384xbf16, #tpu.memory_space<vmem>>, vector<16x384xbf16>
    %cst = arith.constant dense<0.000000e+00> : vector<16x384xf32>
    %2 = tpu.matmul %0, %1, %cst {dimension_numbers = #tpu.dot_dimension_numbers<[1], [0], [0], [1], [0, 0, 1, 1], [], []>} : vector<16x16xbf16>, vector<16x384xbf16>, vector<16x384xf32> -> vector<16x384xf32>
    %cst_3 = arith.constant dense<0.000000e+00> : vector<16xf32>
    %3 = vector.multi_reduction <add>, %2, %cst_3 [1] : vector<16x384xf32> to vector<16xf32>
    %4 = vector.shape_cast %3 : vector<16xf32> to vector<16x1xf32>
    %cst_4 = arith.constant 2.958580e-03 : f32
    %5 = vector.broadcast %cst_4 : f32 to vector<16x1xf32>
    %6 = arith.mulf %4, %5 : vector<16x1xf32>
    %7 = arith.mulf %2, %2 : vector<16x384xf32>
    %cst_5 = arith.constant dense<0.000000e+00> : vector<16xf32>
    %8 = vector.multi_reduction <add>, %7, %cst_5 [1] : vector<16x384xf32> to vector<16xf32>
    %9 = vector.shape_cast %8 : vector<16xf32> to vector<16x1xf32>
    %cst_6 = arith.constant 2.958580e-03 : f32
    %10 = vector.broadcast %cst_6 : f32 to vector<16x1xf32>
    %11 = arith.mulf %9, %10 : vector<16x1xf32>
    %12 = arith.mulf %6, %6 : vector<16x1xf32>
    %13 = arith.subf %11, %12 : vector<16x1xf32>
    %cst_7 = arith.constant 0.000000e+00 : f32
    %14 = vector.broadcast %cst_7 : f32 to vector<16x1xf32>
    %15 = arith.maximumf %13, %14 : vector<16x1xf32>
    %16 = vector.broadcast %6 : vector<16x1xf32> to vector<16x384xf32>
    %17 = arith.subf %2, %16 : vector<16x384xf32>
    %cst_8 = arith.constant 9.99999974E-6 : f32
    %18 = vector.broadcast %cst_8 : f32 to vector<16x1xf32>
    %19 = arith.addf %15, %18 : vector<16x1xf32>
    %20 = math.rsqrt %19 : vector<16x1xf32>
    %21 = vector.broadcast %20 : vector<16x1xf32> to vector<16x384xf32>
    %22 = arith.mulf %17, %21 : vector<16x384xf32>
    %c0_9 = arith.constant 0 : index
    %c0_10 = arith.constant 0 : index
    %23 = vector.load %arg3[%c0_9, %c0_10] : memref<16x1xf32, #tpu.memory_space<vmem>>, vector<16x1xf32>
    %24 = vector.broadcast %23 : vector<16x1xf32> to vector<16x384xf32>
    %25 = arith.mulf %22, %24 : vector<16x384xf32>
    %c0_11 = arith.constant 0 : index
    %c0_12 = arith.constant 0 : index
    %26 = vector.load %arg4[%c0_11, %c0_12] : memref<16x1xf32, #tpu.memory_space<vmem>>, vector<16x1xf32>
    %27 = vector.broadcast %26 : vector<16x1xf32> to vector<16x384xf32>
    %28 = arith.addf %25, %27 : vector<16x384xf32>
    %cst_13 = arith.constant 2.000000e-01 : f32
    %29 = vector.broadcast %cst_13 : f32 to vector<16x384xf32>
    %30 = arith.mulf %29, %28 : vector<16x384xf32>
    %31 = arith.maximumf %28, %30 : vector<16x384xf32>
    %32 = arith.truncf %31 : vector<16x384xf32> to vector<16x384xbf16>
    %c0_14 = arith.constant 0 : index
    %c0_15 = arith.constant 0 : index
    %33 = vector.load %arg5[%c0_14, %c0_15] : memref<16x384xbf16, #tpu.memory_space<vmem>>, vector<16x384xbf16>
    tpu.vector_store %arg5[%c0_14, %c0_15], %32 {strides = array<i32>} : memref<16x384xbf16, #tpu.memory_space<vmem>>, vector<16x384xbf16>,
    return
  }
  func.func @transform_0(%arg0: i32) -> (i32, i32) {
    %c0_i32 = arith.constant 0 : i32
    %c0_i32_0 = arith.constant 0 : i32
    %c0_i32_1 = arith.constant 0 : i32
    return %c0_i32, %c0_i32_0 : i32, i32
  }
  func.func @transform_1(%arg0: i32) -> (i32, i32) {
    %c0_i32 = arith.constant 0 : i32
    %c0_i32_0 = arith.constant 0 : i32
    %c0_i32_1 = arith.constant 0 : i32
    return %c0_i32, %c0_i32_0 : i32, i32
  }
  func.func @transform_2(%arg0: i32) -> (i32, i32) {
    %c0_i32 = arith.constant 0 : i32
    %c0_i32_0 = arith.constant 0 : i32
    %c0_i32_1 = arith.constant 0 : i32
    return %c0_i32, %c0_i32_0 : i32, i32
  }
  func.func @transform_3(%arg0: i32) -> (i32, i32) {
    %c0_i32 = arith.constant 0 : i32
    %c0_i32_0 = arith.constant 0 : i32
    %c0_i32_1 = arith.constant 0 : i32
    return %c0_i32, %c0_i32_0 : i32, i32
  }
  func.func @transform_4(%arg0: i32) -> (i32, i32) {
    %c0_i32 = arith.constant 0 : i32
    %c0_i32_0 = arith.constant 0 : i32
    %c0_i32_1 = arith.constant 0 : i32
    return %c0_i32, %c0_i32_0 : i32, i32
  }
}

module attributes {stable_mosaic.version = 11 : i64} {
  func.func @_fused_l2_l3_kernel(%arg0: i32, %arg1: memref<64x256xbf16, #tpu.memory_space<vmem>>, %arg2: memref<256x32xbf16, #tpu.memory_space<vmem>>, %arg3: memref<1x32xf32, #tpu.memory_space<vmem>>, %arg4: memref<1x32xf32, #tpu.memory_space<vmem>>, %arg5: memref<512x128xbf16, #tpu.memory_space<vmem>>, %arg6: memref<1x128xf32, #tpu.memory_space<vmem>>, %arg7: memref<2x128xf32, #tpu.memory_space<vmem>>) attributes {dimension_semantics = [#tpu.dimension_semantics<arbitrary>], iteration_bounds = array<i64: 1>, scalar_prefetch = 0 : i64, scratch_operands = 0 : i64, tpu.core_type = #tpu.core_type<tc>, window_params = [{pipeline_mode = #tpu.pipeline_mode<synchronous>, transform_indices = @transform_0, window_bounds = array<i64: 64, 256>}, {pipeline_mode = #tpu.pipeline_mode<synchronous>, transform_indices = @transform_1, window_bounds = array<i64: 256, 32>}, {pipeline_mode = #tpu.pipeline_mode<synchronous>, transform_indices = @transform_2, window_bounds = array<i64: 1, 32>}, {pipeline_mode = #tpu.pipeline_mode<synchronous>, transform_indices = @transform_3, window_bounds = array<i64: 1, 32>}, {pipeline_mode = #tpu.pipeline_mode<synchronous>, transform_indices = @transform_4, window_bounds = array<i64: 512, 128>}, {pipeline_mode = #tpu.pipeline_mode<synchronous>, transform_indices = @transform_5, window_bounds = array<i64: 1, 128>}, {pipeline_mode = #tpu.pipeline_mode<synchronous>, transform_indices = @transform_6, window_bounds = array<i64: 2, 128>}]} {
    %c0 = arith.constant 0 : index
    %c0_0 = arith.constant 0 : index
    %0 = vector.load %arg1[%c0, %c0_0] : memref<64x256xbf16, #tpu.memory_space<vmem>>, vector<64x256xbf16>
    %c0_1 = arith.constant 0 : index
    %c0_2 = arith.constant 0 : index
    %1 = vector.load %arg2[%c0_1, %c0_2] : memref<256x32xbf16, #tpu.memory_space<vmem>>, vector<256x32xbf16>
    %cst = arith.constant dense<0.000000e+00> : vector<64x32xf32>
    %2 = tpu.matmul %0, %1, %cst {dimension_numbers = #tpu.dot_dimension_numbers<[1], [0], [0], [1], [0, 0, 1, 1], [], []>} : vector<64x256xbf16>, vector<256x32xbf16>, vector<64x32xf32> -> vector<64x32xf32>
    %cst_3 = arith.constant dense<0.000000e+00> : vector<32xf32>
    %3 = vector.multi_reduction <add>, %2, %cst_3 [0] : vector<64x32xf32> to vector<32xf32>
    %4 = vector.shape_cast %3 : vector<32xf32> to vector<1x32xf32>
    %cst_4 = arith.constant 2.000000e-02 : f32
    %5 = vector.broadcast %cst_4 : f32 to vector<1x32xf32>
    %6 = arith.mulf %4, %5 : vector<1x32xf32>
    %7 = arith.mulf %2, %2 : vector<64x32xf32>
    %cst_5 = arith.constant dense<0.000000e+00> : vector<32xf32>
    %8 = vector.multi_reduction <add>, %7, %cst_5 [0] : vector<64x32xf32> to vector<32xf32>
    %9 = vector.shape_cast %8 : vector<32xf32> to vector<1x32xf32>
    %cst_6 = arith.constant 2.000000e-02 : f32
    %10 = vector.broadcast %cst_6 : f32 to vector<1x32xf32>
    %11 = arith.mulf %9, %10 : vector<1x32xf32>
    %12 = arith.mulf %6, %6 : vector<1x32xf32>
    %13 = arith.subf %11, %12 : vector<1x32xf32>
    %cst_7 = arith.constant 0.000000e+00 : f32
    %14 = vector.broadcast %cst_7 : f32 to vector<1x32xf32>
    %15 = arith.maximumf %13, %14 : vector<1x32xf32>
    %16 = vector.broadcast %6 : vector<1x32xf32> to vector<64x32xf32>
    %17 = arith.subf %2, %16 : vector<64x32xf32>
    %cst_8 = arith.constant 9.99999974E-6 : f32
    %18 = vector.broadcast %cst_8 : f32 to vector<1x32xf32>
    %19 = arith.addf %15, %18 : vector<1x32xf32>
    %20 = math.rsqrt %19 : vector<1x32xf32>
    %21 = vector.broadcast %20 : vector<1x32xf32> to vector<64x32xf32>
    %22 = arith.mulf %17, %21 : vector<64x32xf32>
    %c0_9 = arith.constant 0 : index
    %c0_10 = arith.constant 0 : index
    %23 = vector.load %arg3[%c0_9, %c0_10] : memref<1x32xf32, #tpu.memory_space<vmem>>, vector<1x32xf32>
    %24 = vector.broadcast %23 : vector<1x32xf32> to vector<64x32xf32>
    %25 = arith.mulf %22, %24 : vector<64x32xf32>
    %c0_11 = arith.constant 0 : index
    %c0_12 = arith.constant 0 : index
    %26 = vector.load %arg4[%c0_11, %c0_12] : memref<1x32xf32, #tpu.memory_space<vmem>>, vector<1x32xf32>
    %27 = vector.broadcast %26 : vector<1x32xf32> to vector<64x32xf32>
    %28 = arith.addf %25, %27 : vector<64x32xf32>
    %cst_13 = arith.constant 2.000000e-01 : f32
    %29 = vector.broadcast %cst_13 : f32 to vector<64x32xf32>
    %30 = arith.mulf %29, %28 : vector<64x32xf32>
    %31 = arith.maximumf %28, %30 : vector<64x32xf32>
    %32 = arith.truncf %31 : vector<64x32xf32> to vector<64x32xbf16>
    %33 = vector.extract_strided_slice %32 {offsets = [0, 0], sizes = [2, 32], strides = [1, 1]} : vector<64x32xbf16> to vector<2x32xbf16>
    %34 = vector.extract_strided_slice %32 {offsets = [2, 0], sizes = [2, 32], strides = [1, 1]} : vector<64x32xbf16> to vector<2x32xbf16>
    %35 = vector.extract_strided_slice %32 {offsets = [4, 0], sizes = [2, 32], strides = [1, 1]} : vector<64x32xbf16> to vector<2x32xbf16>
    %36 = vector.extract_strided_slice %32 {offsets = [6, 0], sizes = [2, 32], strides = [1, 1]} : vector<64x32xbf16> to vector<2x32xbf16>
    %37 = vector.extract_strided_slice %32 {offsets = [10, 0], sizes = [2, 32], strides = [1, 1]} : vector<64x32xbf16> to vector<2x32xbf16>
    %38 = vector.extract_strided_slice %32 {offsets = [12, 0], sizes = [2, 32], strides = [1, 1]} : vector<64x32xbf16> to vector<2x32xbf16>
    %39 = vector.extract_strided_slice %32 {offsets = [14, 0], sizes = [2, 32], strides = [1, 1]} : vector<64x32xbf16> to vector<2x32xbf16>
    %40 = vector.extract_strided_slice %32 {offsets = [16, 0], sizes = [2, 32], strides = [1, 1]} : vector<64x32xbf16> to vector<2x32xbf16>
    %41 = vector.extract_strided_slice %32 {offsets = [20, 0], sizes = [2, 32], strides = [1, 1]} : vector<64x32xbf16> to vector<2x32xbf16>
    %42 = vector.extract_strided_slice %32 {offsets = [22, 0], sizes = [2, 32], strides = [1, 1]} : vector<64x32xbf16> to vector<2x32xbf16>
    %43 = vector.extract_strided_slice %32 {offsets = [24, 0], sizes = [2, 32], strides = [1, 1]} : vector<64x32xbf16> to vector<2x32xbf16>
    %44 = vector.extract_strided_slice %32 {offsets = [26, 0], sizes = [2, 32], strides = [1, 1]} : vector<64x32xbf16> to vector<2x32xbf16>
    %45 = vector.extract_strided_slice %32 {offsets = [30, 0], sizes = [2, 32], strides = [1, 1]} : vector<64x32xbf16> to vector<2x32xbf16>
    %46 = vector.extract_strided_slice %32 {offsets = [32, 0], sizes = [2, 32], strides = [1, 1]} : vector<64x32xbf16> to vector<2x32xbf16>
    %47 = vector.extract_strided_slice %32 {offsets = [34, 0], sizes = [2, 32], strides = [1, 1]} : vector<64x32xbf16> to vector<2x32xbf16>
    %48 = vector.extract_strided_slice %32 {offsets = [36, 0], sizes = [2, 32], strides = [1, 1]} : vector<64x32xbf16> to vector<2x32xbf16>
    %49 = tpu.concatenate %33, %34, %35, %36, %37, %38, %39, %40, %41, %42, %43, %44, %45, %46, %47, %48 in 1 : vector<2x32xbf16>, vector<2x32xbf16>, vector<2x32xbf16>, vector<2x32xbf16>, vector<2x32xbf16>, vector<2x32xbf16>, vector<2x32xbf16>, vector<2x32xbf16>, vector<2x32xbf16>, vector<2x32xbf16>, vector<2x32xbf16>, vector<2x32xbf16>, vector<2x32xbf16>, vector<2x32xbf16>, vector<2x32xbf16>, vector<2x32xbf16> -> vector<2x512xbf16>
    %c0_14 = arith.constant 0 : index
    %c0_15 = arith.constant 0 : index
    %50 = vector.load %arg5[%c0_14, %c0_15] : memref<512x128xbf16, #tpu.memory_space<vmem>>, vector<512x128xbf16>
    %cst_16 = arith.constant dense<0.000000e+00> : vector<2x128xf32>
    %51 = tpu.matmul %49, %50, %cst_16 {dimension_numbers = #tpu.dot_dimension_numbers<[1], [0], [0], [1], [0, 0, 1, 1], [], []>} : vector<2x512xbf16>, vector<512x128xbf16>, vector<2x128xf32> -> vector<2x128xf32>
    %c0_17 = arith.constant 0 : index
    %c0_18 = arith.constant 0 : index
    %52 = vector.load %arg6[%c0_17, %c0_18] : memref<1x128xf32, #tpu.memory_space<vmem>>, vector<1x128xf32>
    %53 = vector.broadcast %52 : vector<1x128xf32> to vector<2x128xf32>
    %54 = arith.addf %51, %53 : vector<2x128xf32>
    %c0_19 = arith.constant 0 : index
    %c0_20 = arith.constant 0 : index
    %55 = vector.load %arg7[%c0_19, %c0_20] : memref<2x128xf32, #tpu.memory_space<vmem>>, vector<2x128xf32>
    tpu.vector_store %arg7[%c0_19, %c0_20], %54 {strides = array<i32>} : memref<2x128xf32, #tpu.memory_space<vmem>>, vector<2x128xf32>,
    return
  }
  func.func @transform_0(%arg0: i32) -> (i32, i32) {
    %c0_i32 = arith.constant 0 : i32
    %c0_i32_0 = arith.constant 0 : i32
    %c0_i32_1 = arith.constant 0 : i32
    return %c0_i32, %c0_i32_0 : i32, i32
  }
  func.func @transform_1(%arg0: i32) -> (i32, i32) {
    %c0_i32 = arith.constant 0 : i32
    %c0_i32_0 = arith.constant 0 : i32
    %c0_i32_1 = arith.constant 0 : i32
    return %c0_i32, %c0_i32_0 : i32, i32
  }
  func.func @transform_2(%arg0: i32) -> (i32, i32) {
    %c0_i32 = arith.constant 0 : i32
    %c0_i32_0 = arith.constant 0 : i32
    %c0_i32_1 = arith.constant 0 : i32
    return %c0_i32, %c0_i32_0 : i32, i32
  }
  func.func @transform_3(%arg0: i32) -> (i32, i32) {
    %c0_i32 = arith.constant 0 : i32
    %c0_i32_0 = arith.constant 0 : i32
    %c0_i32_1 = arith.constant 0 : i32
    return %c0_i32, %c0_i32_0 : i32, i32
  }
  func.func @transform_4(%arg0: i32) -> (i32, i32) {
    %c0_i32 = arith.constant 0 : i32
    %c0_i32_0 = arith.constant 0 : i32
    %c0_i32_1 = arith.constant 0 : i32
    return %c0_i32, %c0_i32_0 : i32, i32
  }
  func.func @transform_5(%arg0: i32) -> (i32, i32) {
    %c0_i32 = arith.constant 0 : i32
    %c0_i32_0 = arith.constant 0 : i32
    %c0_i32_1 = arith.constant 0 : i32
    return %c0_i32, %c0_i32_0 : i32, i32
  }
  func.func @transform_6(%arg0: i32) -> (i32, i32) {
    %c0_i32 = arith.constant 0 : i32
    %c0_i32_0 = arith.constant 0 : i32
    %c0_i32_1 = arith.constant 0 : i32
    return %c0_i32, %c0_i32_0 : i32, i32
  }
}

</mosaic_0001>

<bundles_post_ra>
// kernel: squeeze.0
= control target key start
LH: loop header
LB: loop body
LE: loop exit
PB: predicated region body
PF: predicated region fallthrough
CT: control target
= control target key end

     0   :  { %vm69_vm0 = vcmask 72704   ;;  %s306_s10 = smov 119   ;;  %vm83_vm1 = vcmask 89088   ;;  %s307_s11 = smov 93   ;;  %vm63_vm2 = vcmask 105472   ;;  %vm73_vm3 = vcmask 31744   ;;  %s355_s0 = inlined_call_operand.vmem [shape: bf16[2,13,13,1], index: 0, kind: input, shape index: {}]   ;;  %s356_s1 = inlined_call_operand.vmem [shape: bf16[1,338], index: 1, kind: output, shape index: {}]  }
   0x1   :  { %v279_v0 = vld [vmem:[%s355_s0 + $0x8] sm:$0xff]   ;;  %v276_v1 = vld [vmem:[%s355_s0] sm:$0xff]   ;;  %s305_s0 = smov 106   ;;  %s308_s12 = smov 104   ;;  %vm76_vm4 = vcmask 1048504   ;;  %vm135_vm5 = vcmask 671272  }
   0x2   :  { %v273_v2 = vunpack.c.l.bf16 %v279_v0  ;;  %v278_v3 = vunpack.c.h.bf16 %v276_v1  ;;  %v277_v4 = vunpack.c.l.bf16 %v276_v1  ;;  %v274_v14 = vunpack.c.h.bf16 %v279_v0  ;;  %s309_s13 = smov 117   ;;  %s310_s14 = smov 91  }
   0x3   :  { %s311_s15 = smov 78   ;;  %s312_s16 = smov 80   ;;  %vm155_vm6 = vcmask 564672   ;;  %vm87_vm7 = vcmask 15360   ;;  %vm90_vm8 = vcmask 1048488   ;;  %vm96_vm9 = vcmask 974672  }
   0x4   :  { %33 = vst [vmem:[#allocation1 + $0x10] sm:$0xff] %v273_v2  ;;  %s313_s17 = smov 69   ;;  %s314_s18 = smov 65   ;;  %vm103_vm10 = vcmask 958272   ;;  %vm109_vm11 = vcmask 868072   ;;  %vm116_vm12 = vcmask 851672  }
   0x5   :  { %48 = vst [vmem:[#allocation1 + $0x8] sm:$0xff] %v278_v3  ;;  %s315_s19 = smov 67   ;;  %s316_s20 = smov 56   ;;  %vm175_vm13 = vcmask 458072   ;;  %vm129_vm14 = vcmask 745072   ;;  %vm122_vm15 = vcmask 761472  }
   0x6   :  { %61 = vst [vmem:[#allocation1] sm:$0xff] %v277_v4  ;;  %s317_s21 = smov 52   ;;  %s318_s22 = smov 54  }
   0x7   :  { %18 = vst [vmem:[#allocation1 + $0x18] sm:$0xff] %v274_v14  ;;  %s319_s23 = smov 43   ;;  %s320_s24 = smov 39  }
   0x8   :  { %s321_s25 = smov 41   ;;  %s322_s26 = smov 30  }
   0x9   :  { %s323_s27 = smov 26   ;;  %s324_s28 = smov 28  }
   0xa   :  { %s325_s29 = smov 17   ;;  %s326_s30 = smov 13  }
   0xb   :  { %v66_v5 = vld [vmem:[#allocation1 + $0x16] sm:$0x1]   ;;  %v93_v7 = vld [vmem:[#allocation1 + $0x15] sm:$0x1]   ;;  %v106_v9 = vld [vmem:[#allocation1 + $0x14] sm:$0x1]  }
   0xc   :  { %v68_v6 = vld [vmem:[#allocation1 + $0x16] sm:$0x1]   ;;  %94 = vrot.lane.b32.xlu1 %v93_v7, %s305_s0  ;;  %v80_v10 = vld [vmem:[#allocation1 + $0x9] sm:$0x1]   ;;  %107 = vrot.lane.b32.xlu2 %v106_v9, %s307_s11  ;;  %v100_v12 = vld [vmem:[#allocation1 + $0x8] sm:$0x1]  }
   0xd   :  { %v70_v8 = vsel %vm69_vm0, %v68_v6, %v66_v5  ;;  %v82_v11 = vld [vmem:[#allocation1 + $0x9] sm:$0x1]   ;;  %v113_v15 = vld [vmem:[#allocation1 + $0x7] sm:$0x1]   ;;  %v126_v16 = vld [vmem:[#allocation1 + $0x6] sm:$0x1]  }
   0xe   :  { %71 = vrot.lane.b32.xlu0 %v70_v8, %s306_s10  ;;  %v84_v13 = vsel %vm83_vm1, %v82_v11, %v80_v10  ;;  %v119_v17 = vld [vmem:[#allocation1 + $0x13] sm:$0x1]   ;;  %v132_v18 = vld [vmem:[#allocation1 + $0x1c] sm:$0x1]   ;;  %v146_v19 = vld [vmem:[#allocation1 + $0x5] sm:$0x1]  }
   0xf   :  { %v139_v20 = vld [vmem:[#allocation1 + $0x12] sm:$0x1]   ;;  %v152_v21 = vld [vmem:[#allocation1 + $0x1b] sm:$0x1]   ;;  %v166_v22 = vld [vmem:[#allocation1 + $0x4] sm:$0x1]  }
  0x10   :  { %v159_v23 = vld [vmem:[#allocation1 + $0x11] sm:$0x1]   ;;  %v172_v24 = vld [vmem:[#allocation1 + $0x1a] sm:$0x1]   ;;  %v186_v25 = vld [vmem:[#allocation1 + $0x3] sm:$0x1]  }
  0x11   :  { %v179_v26 = vld [vmem:[#allocation1 + $0x10] sm:$0x1]   ;;  %v192_v27 = vld [vmem:[#allocation1 + $0x19] sm:$0x1]   ;;  %v206_v28 = vld [vmem:[#allocation1 + $0x2] sm:$0x1]  }
  0x12   :  { %v199_v29 = vld [vmem:[#allocation1 + $0xc] sm:$0x1]   ;;  %v212_v30 = vld [vmem:[#allocation1 + $0x18] sm:$0x1]   ;;  %v226_v31 = vld [vmem:[#allocation1 + $0x1] sm:$0x1]  }
  0x13   :  { %v219_v32 = vld [vmem:[#allocation1 + $0xb] sm:$0x1]   ;;  %v232_v33 = vld [vmem:[#allocation1 + $0x17] sm:$0x1]   ;;  %s327_s2 = smov 15   ;;  %s328_s3 = smov 4  }
  0x14   :  { %101 = vrot.lane.b32.xlu1 %v100_v12, %s308_s12  ;;  %114 = vrot.lane.b32.xlu2 %v113_v15, %s310_s14  ;;  %v239_v34 = vld [vmem:[#allocation1 + $0xa] sm:$0x1]   ;;  %s329_s4 = smov 2   ;;  %v62_v35 = vld [vmem:[#allocation1] sm:$0x1]   ;;  %vm195_vm0 = vcmask 351472  }
  0x15   :  { %64 = vst.msk [vmem:[#allocation0] sm:$0x1] %vm63_vm2, %v62_v35   ;;  %vm149_vm1 = vcmask 638472   ;;  %vm142_vm2 = vcmask 654872  }
  0x16   :  { %85 = vrot.lane.b32.xlu0 %v84_v13, %s309_s13 }
  0x1c   :  { %127 = vrot.lane.b32.xlu1 %v126_v16, %s311_s15  ;;  %133 = vrot.lane.b32.xlu2 %v132_v18, %s313_s17 }
  0x1e   :  { %120 = vrot.lane.b32.xlu0 %v119_v17, %s312_s16 }
  0x24   :  { %147 = vrot.lane.b32.xlu1 %v146_v19, %s314_s18  ;;  %153 = vrot.lane.b32.xlu2 %v152_v21, %s316_s20 }
  0x26   :  { %140 = vrot.lane.b32.xlu0 %v139_v20, %s315_s19 }
  0x2c   :  { %167 = vrot.lane.b32.xlu1 %v166_v22, %s317_s21  ;;  %173 = vrot.lane.b32.xlu2 %v172_v24, %s319_s23 }
  0x2e   :  { %160 = vrot.lane.b32.xlu0 %v159_v23, %s318_s22 }
  0x34   :  { %187 = vrot.lane.b32.xlu1 %v186_v25, %s320_s24  ;;  %193 = vrot.lane.b32.xlu2 %v192_v27, %s322_s26 }
  0x36   :  { %180 = vrot.lane.b32.xlu0 %v179_v26, %s321_s25 }
  0x3c   :  { %207 = vrot.lane.b32.xlu1 %v206_v28, %s323_s27  ;;  %213 = vrot.lane.b32.xlu2 %v212_v30, %s325_s29 }
  0x3e   :  { %200 = vrot.lane.b32.xlu0 %v199_v29, %s324_s28 }
  0x44   :  { %227 = vrot.lane.b32.xlu1 %v226_v31, %s326_s30  ;;  %233 = vrot.lane.b32.xlu2 %v232_v33, %s328_s3 }
  0x46   :  { %220 = vrot.lane.b32.xlu0 %v219_v32, %s327_s2 }
  0x4e   :  { %240 = vrot.lane.b32.xlu0 %v239_v34, %s329_s4 }
  0x66   :  { %v108_v36 = vpop.permute.xlu2 %107  }
  0x6e   :  { %v115_v37 = vpop.permute.xlu2 %114  }
  0x76   :  { %v134_v38 = vpop.permute.xlu2 %133  }
  0x7e   :  { %v95_v39 = vpop.permute.xlu1 %94   ;;  %v154_v41 = vpop.permute.xlu2 %153  }
  0x80   :  { %v72_v40 = vpop.permute.xlu0 %71  }
  0x81   :  { %75 = vst.msk [vmem:[#allocation0 + $0x10] sm:$0x1] %vm73_vm3, %v72_v40   ;;  %vm215_vm3 = vcmask 244872  }
  0x82   :  { %78 = vst.msk [vmem:[#allocation0 + $0x8] sm:$0x1] %vm76_vm4, %v72_v40   ;;  %vm169_vm4 = vcmask 531872  }
  0x83   :  { %137 = vst.msk [vmem:[#allocation0 + $0x10] sm:$0x1] %vm135_vm5, %v134_v38   ;;  %vm162_vm5 = vcmask 548272  }
  0x84   :  { %157 = vst.msk [vmem:[#allocation0 + $0x10] sm:$0x1] %vm155_vm6, %v154_v41   ;;  %vm235_vm6 = vcmask 138272  }
  0x86   :  { %v102_v42 = vpop.permute.xlu1 %101   ;;  %v174_v44 = vpop.permute.xlu2 %173  }
  0x87   :  { %177 = vst.msk [vmem:[#allocation0 + $0x10] sm:$0x1] %vm175_vm13, %v174_v44   ;;  %vm242_vm13 = vcmask 121872  }
  0x88   :  { %v86_v43 = vpop.permute.xlu0 %85  }
  0x89   :  { %89 = vst.msk [vmem:[#allocation0 + $0x8] sm:$0x1] %vm87_vm7, %v86_v43   ;;  %vm189_vm7 = vcmask 425272  }
  0x8a   :  { %91 = vst.msk [vmem:[#allocation0] sm:$0x1] %vm90_vm8, %v86_v43   ;;  %vm182_vm8 = vcmask 441672  }
  0x8b   :  { %98 = vst.msk [vmem:[#allocation0 + $0x8] sm:$0x1] %vm96_vm9, %v95_v39   ;;  %vm209_vm9 = vcmask 318672  }
  0x8c   :  { %104 = vst.msk [vmem:[#allocation0] sm:$0x1] %vm103_vm10, %v102_v42   ;;  %vm202_vm10 = vcmask 335072  }
  0x8d   :  { %111 = vst.msk [vmem:[#allocation0 + $0x8] sm:$0x1] %vm109_vm11, %v108_v36   ;;  %vm229_vm11 = vcmask 212072  }
  0x8e   :  { %117 = vst.msk [vmem:[#allocation0] sm:$0x1] %vm116_vm12, %v115_v37   ;;  %v128_v45 = vpop.permute.xlu1 %127   ;;  %v194_v47 = vpop.permute.xlu2 %193   ;;  %vm222_vm12 = vcmask 228472  }
  0x8f   :  { %130 = vst.msk [vmem:[#allocation0] sm:$0x1] %vm129_vm14, %v128_v45  }
  0x90   :  { %v121_v46 = vpop.permute.xlu0 %120   ;;  %197 = vst.msk [vmem:[#allocation0 + $0x10] sm:$0x1] %vm195_vm0, %v194_v47  }
  0x91   :  { %124 = vst.msk [vmem:[#allocation0 + $0x8] sm:$0x1] %vm122_vm15, %v121_v46  }
  0x96   :  { %v148_v48 = vpop.permute.xlu1 %147   ;;  %v214_v50 = vpop.permute.xlu2 %213  }
  0x97   :  { %150 = vst.msk [vmem:[#allocation0] sm:$0x1] %vm149_vm1, %v148_v48  }
  0x98   :  { %v141_v49 = vpop.permute.xlu0 %140   ;;  %217 = vst.msk [vmem:[#allocation0 + $0x10] sm:$0x1] %vm215_vm3, %v214_v50  }
  0x99   :  { %144 = vst.msk [vmem:[#allocation0 + $0x8] sm:$0x1] %vm142_vm2, %v141_v49  }
  0x9e   :  { %v168_v51 = vpop.permute.xlu1 %167   ;;  %v234_v53 = vpop.permute.xlu2 %233  }
  0x9f   :  { %170 = vst.msk [vmem:[#allocation0] sm:$0x1] %vm169_vm4, %v168_v51  }
  0xa0   :  { %v161_v52 = vpop.permute.xlu0 %160   ;;  %237 = vst.msk [vmem:[#allocation0 + $0x10] sm:$0x1] %vm235_vm6, %v234_v53  }
  0xa1   :  { %164 = vst.msk [vmem:[#allocation0 + $0x8] sm:$0x1] %vm162_vm5, %v161_v52  }
  0xa6   :  { %v188_v54 = vpop.permute.xlu1 %187  }
  0xa7   :  { %190 = vst.msk [vmem:[#allocation0] sm:$0x1] %vm189_vm7, %v188_v54   ;;  %v260_v56 = vld [vmem:[#allocation0 + $0x10] sm:$0x3] }
  0xa8   :  { %v181_v55 = vpop.permute.xlu0 %180   ;;  %v261_v57 = vpack.c.bf16 0.0, %v260_v56 }
  0xa9   :  { %184 = vst.msk [vmem:[#allocation0 + $0x8] sm:$0x1] %vm182_vm8, %v181_v55  }
  0xaa   :  { %270 = vst [vmem:[%s356_s1 + $0x2] sm:$0x1] %v261_v57 }
  0xae   :  { %v208_v58 = vpop.permute.xlu1 %207  }
  0xaf   :  { %210 = vst.msk [vmem:[#allocation0] sm:$0x1] %vm209_vm9, %v208_v58  }
  0xb0   :  { %v201_v59 = vpop.permute.xlu0 %200  }
  0xb1   :  { %204 = vst.msk [vmem:[#allocation0 + $0x8] sm:$0x1] %vm202_vm10, %v201_v59  }
  0xb6   :  { %v228_v60 = vpop.permute.xlu1 %227  }
  0xb7   :  { %230 = vst.msk [vmem:[#allocation0] sm:$0x1] %vm229_vm11, %v228_v60  }
  0xb8   :  { %v221_v61 = vpop.permute.xlu0 %220  }
  0xb9   :  { %224 = vst.msk [vmem:[#allocation0 + $0x8] sm:$0x1] %vm222_vm12, %v221_v61  }
  0xbe   :  { %v247_v62 = vld [vmem:[#allocation0] sm:$0x3] }
  0xbf   :  { %v248_v63 = vpack.c.bf16 0.0, %v247_v62 }
  0xc0   :  { %v241_v0 = vpop.permute.xlu0 %240  }
  0xc1   :  { %244 = vst.msk [vmem:[#allocation0 + $0x8] sm:$0x1] %vm242_vm13, %v241_v0  }
  0xc2   :  { %251 = vst [vmem:[%s356_s1] sm:$0x1] %v248_v63 }
  0xc8   :  { %v253_v1 = vld [vmem:[#allocation0 + $0x8] sm:$0x3] }
  0xc9   :  { %v254_v2 = vpack.c.bf16 0.0, %v253_v1 }
  0xcb   :  { %269 = vst [vmem:[%s356_s1 + $0x1] sm:$0x1] %v254_v2 }

// kernel: discriminator_forward.2
= control target key start
LH: loop header
LB: loop body
LE: loop exit
PB: predicated region body
PF: predicated region fallthrough
CT: control target
= control target key end

     0   :  { %vm45_vm0 = vcmask 130048   ;;  %v248_v10 = vmov 0   ;;  %s355_s1 = inlined_call_operand.vmem [shape: bf16[16,384], index: 1, kind: input, shape index: {}]   ;;  %s356_s0 = inlined_call_operand.vmem [shape: bf16[16,16], index: 0, kind: input, shape index: {}]   ;;  %s357_s2 = inlined_call_operand.vmem [shape: f32[16,1], index: 2, kind: input, shape index: {}]   ;;  %s358_s3 = inlined_call_operand.vmem [shape: f32[16,1], index: 3, kind: input, shape index: {}]   ;;  %s359_s4 = inlined_call_operand.vmem [shape: bf16[16,384], index: 4, kind: output, shape index: {}]  }
   0x1   :  { %v223_v0 = vld [vmem:[%s355_s1] sm:$0xf]  ;;  %v238_v1 = vld [vmem:[%s355_s1 + $0x8] sm:$0xf0]  ;;  %v237_v2 = vld [vmem:[%s355_s1 + $0x4] sm:$0xf]  ;;  %242 = vset.pattern.permute.xlu0 %v248_v10  ;;  %243 = vset.pattern.permute.xlu1 %v248_v10 }
   0x2   :  { %v224_v3 = vor.u32 %v238_v1, %v223_v0  ;;  %v225_v4 = vld [vmem:[%s355_s1 + $0xc] sm:$0xf0]  ;;  %v231_v5 = vld [vmem:[%s355_s1 + $0x8] sm:$0xf]  ;;  %v239_v6 = vld [vmem:[%s355_s1 + $0x10] sm:$0xf0]  ;;  %241 = vset.pattern.permute.xlu2 %v248_v10 }
   0x3   :  { %v228_v7 = vor.u32 %v237_v2, %v225_v4  ;;  %v232_v8 = vor.u32 %v239_v6, %v231_v5  ;;  %v236_v9 = vld [vmem:[%s356_s0] sm:$0xff]  ;;  %v158_v32 = vld [vmem:[%s357_s2 + $0x8] sm:$0xff] }
   0x4   :  { %56 = vmatpush.bf16.msra.mxu0 %v224_v3  ;;  %v157_v25 = vld [vmem:[%s357_s2] sm:$0xff]  ;;  %v176_v34 = vld [vmem:[%s358_s3 + $0x8] sm:$0xff] }
   0x5   :  { %70 = vmatpush.bf16.msra.mxu1 %v228_v7  ;;  %84 = vmatpush.bf16.msra.mxu2 %v232_v8  ;;  %v175_v33 = vld [vmem:[%s358_s3] sm:$0xff] }
   0x6   :  { %161 = vperm.xlu2 %241, %v157_v25  }
   0x7   :  { %233 = vmatmul.msk.bf16.vlgmr.msra.gmra.mxu0 %vm45_vm0, %v236_v9 }
   0x8   :  { %234 = vmatmul.msk.bf16.vlgmr.msra.gmra.mxu1 %vm45_vm0, %v236_v9  ;;  %235 = vmatmul.msk.bf16.vlgmr.msra.gmra.mxu2 %vm45_vm0, %v236_v9 }
   0xe   :  { %166 = vperm.xlu2 %241, %v158_v32  }
  0x60   :  { %v162_v63 = vpop.permute.xlu2 %161 }
  0x84   :  { %v295_v11 = vpop.f32.mrf.mxu0 }
  0x85   :  { %v297_v12 = vpop.f32.mrf.mxu1  ;;  %v101_v13 = vmul.f32 %v295_v11, %v295_v11 }
  0x86   :  { %v102_v14 = vmul.f32 %v297_v12, %v297_v12  ;;  %v91_v15 = vadd.f32 %v297_v12, %v295_v11 }
  0x88   :  { %v107_v16 = vadd.f32 %v102_v14, %v101_v13 }
  0x8b   :  { %v305_v17 = vpop.f32.mrf.mxu2 }
  0x8c   :  { %v92_v18 = vadd.f32 %v91_v15, %v305_v17  ;;  %v103_v19 = vmul.f32 %v305_v17, %v305_v17  ;;  %v310_v20 = vpop.f32.mrf.mxu0 }
  0x8d   :  { %v312_v21 = vpop.f32.mrf.mxu1  ;;  %v104_v23 = vmul.f32 %v310_v20, %v310_v20 }
  0x8e   :  { %93 = vadd.xlane.f32.xlu0 %v92_v18  ;;  %v108_v22 = vadd.f32 %v107_v16, %v103_v19  ;;  %v105_v24 = vmul.f32 %v312_v21, %v312_v21  ;;  %v95_v26 = vadd.f32 %v312_v21, %v310_v20 }
  0x90   :  { %109 = vadd.xlane.f32.xlu1 %v108_v22  ;;  %v111_v30 = vadd.f32 %v105_v24, %v104_v23 }
  0x93   :  { %v323_v27 = vpop.f32.mrf.mxu2 }
  0x94   :  { %v106_v28 = vmul.f32 %v323_v27, %v323_v27  ;;  %v96_v29 = vadd.f32 %v95_v26, %v323_v27 }
  0x96   :  { %97 = vadd.xlane.f32.xlu0 %v96_v29  ;;  %v112_v31 = vadd.f32 %v111_v30, %v106_v28  ;;  %v167_v28 = vpop.permute.xlu2 %166 }
  0x98   :  { %113 = vadd.xlane.f32.xlu1 %v112_v31 }
  0xaa   :  { %179 = vperm.xlu0 %242, %v175_v33  }
  0xb1   :  { %184 = vperm.xlu1 %243, %v176_v34  }
 0x101   :  { %v94_v35 = vpop.xlane.xlu0 %93 }
 0x102   :  { %v99_v36 = vmul.f32 0.00295858, %v94_v35 }
 0x103   :  { %v110_v37 = vpop.xlane.xlu1 %109 }
 0x104   :  { %v115_v38 = vmul.f32 0.00295858, %v110_v37  ;;  %v117_v39 = vmul.f32 %v99_v36, %v99_v36  ;;  %v123_v59 = vsub.f32 %v295_v11, %v99_v36  ;;  %v124_v60 = vsub.f32 %v297_v12, %v99_v36 }
 0x105   :  { %v125_v61 = vsub.f32 %v305_v17, %v99_v36 }
 0x106   :  { %v119_v40 = vsub.f32 %v115_v38, %v117_v39 }
 0x108   :  { %v121_v41 = vmax.f32 %v119_v40, 0.0 }
 0x109   :  { %v98_v42 = vpop.xlane.xlu0 %97 }
 0x10a   :  { %v129_v43 = vadd.f32 1e-05, %v121_v41  ;;  %v100_v44 = vmul.f32 0.00295858, %v98_v42 }
 0x10b   :  { %v114_v45 = vpop.xlane.xlu1 %113 }
 0x10c   :  { %244 = vrsqrt.f32 %v129_v43  ;;  %v116_v46 = vmul.f32 0.00295858, %v114_v45  ;;  %v118_v47 = vmul.f32 %v100_v44, %v100_v44  ;;  %vm137_vm2 = vweird.f32 %v129_v43 }
 0x10d   :  { %v126_v12 = vsub.f32 %v310_v20, %v100_v44  ;;  %v127_v14 = vsub.f32 %v312_v21, %v100_v44  ;;  %v128_v16 = vsub.f32 %v323_v27, %v100_v44 }
 0x10e   :  { %v120_v48 = vsub.f32 %v116_v46, %v118_v47 }
 0x110   :  { %v122_v49 = vmax.f32 %v120_v48, 0.0 }
 0x112   :  { %v245_v50 = vpop.eup %244  ;;  %v130_v51 = vadd.f32 1e-05, %v122_v49 }
 0x113   :  { %v132_v52 = vmul.f32 %v245_v50, %v129_v43  ;;  %vm138_vm1 = vweird.f32 %v245_v50 }
 0x114   :  { %246 = vrsqrt.f32 %v130_v51  ;;  %vm139_vm3 = vmor %vm137_vm2, %vm138_vm1  ;;  %vm147_vm5 = vweird.f32 %v130_v51 }
 0x115   :  { %v133_v53 = vmul.f32 %v245_v50, %v132_v52 }
 0x117   :  { %v134_v54 = vmul.f32 0.5, %v133_v53 }
 0x119   :  { %v135_v55 = vsub.f32 1.5, %v134_v54 }
 0x11a   :  { %v247_v56 = vpop.eup %246 }
 0x11b   :  { %v142_v57 = vmul.f32 %v247_v56, %v130_v51  ;;  %v136_v58 = vmul.f32 %v245_v50, %v135_v55  ;;  %vm148_vm4 = vweird.f32 %v247_v56 }
 0x11c   :  { %v180_v5 = vpop.permute.xlu0 %179  ;;  %vm149_vm6 = vmor %vm147_vm5, %vm148_vm4 }
 0x11d   :  { %v143_v62 = vmul.f32 %v247_v56, %v142_v57  ;;  %v140_v0 = vsel %vm139_vm3, %v245_v50, %v136_v58 }
 0x11e   :  { %v151_v1 = vmul.f32 %v140_v0, %v123_v59  ;;  %v152_v2 = vmul.f32 %v140_v0, %v124_v60  ;;  %v153_v3 = vmul.f32 %v140_v0, %v125_v61 }
 0x11f   :  { %v144_v4 = vmul.f32 0.5, %v143_v62 }
 0x120   :  { %v169_v6 = vmul.f32 %v162_v63, %v151_v1  ;;  %v170_v7 = vmul.f32 %v162_v63, %v152_v2  ;;  %v171_v8 = vmul.f32 %v162_v63, %v153_v3 }
 0x121   :  { %v145_v9 = vsub.f32 1.5, %v144_v4 }
 0x122   :  { %v187_v10 = vadd.f32 %v180_v5, %v169_v6  ;;  %v188_v13 = vadd.f32 %v180_v5, %v170_v7  ;;  %v189_v11 = vadd.f32 %v180_v5, %v171_v8 }
 0x123   :  { %v146_v15 = vmul.f32 %v247_v56, %v145_v9  ;;  %v185_v31 = vpop.permute.xlu1 %184 }
 0x124   :  { %v193_v17 = vmul.f32 0.2, %v187_v10  ;;  %v194_v18 = vmul.f32 0.2, %v188_v13  ;;  %v195_v19 = vmul.f32 0.2, %v189_v11 }
 0x125   :  { %v150_v22 = vsel %vm149_vm6, %v247_v56, %v146_v15 }
 0x126   :  { %v154_v23 = vmul.f32 %v150_v22, %v126_v12  ;;  %v155_v24 = vmul.f32 %v150_v22, %v127_v14  ;;  %v156_v25 = vmul.f32 %v150_v22, %v128_v16  ;;  %v199_v26 = vmax.f32 %v187_v10, %v193_v17 }
 0x127   :  { %v200_v29 = vmax.f32 %v188_v13, %v194_v18  ;;  %v201_v30 = vmax.f32 %v189_v11, %v195_v19 }
 0x128   :  { %v172_v32 = vmul.f32 %v167_v28, %v154_v23  ;;  %v173_v20 = vmul.f32 %v167_v28, %v155_v24  ;;  %v174_v33 = vmul.f32 %v167_v28, %v156_v25 }
 0x129   :  { %v205_v21 = vpack.c.bf16 %v200_v29, %v199_v26  ;;  %v206_v34 = vpack.c.bf16 %v201_v30, %v201_v30 }
 0x12a   :  { %v190_v35 = vadd.f32 %v185_v31, %v172_v32  ;;  %v191_v27 = vadd.f32 %v185_v31, %v173_v20  ;;  %v192_v36 = vadd.f32 %v185_v31, %v174_v33 }
 0x12b   :  { %209 = vst [vmem:[%s359_s4] sm:$0xff] %v205_v21 }
 0x12c   :  { %210 = vst [vmem:[%s359_s4 + $0x8] sm:$0xf] %v206_v34  ;;  %v196_v37 = vmul.f32 0.2, %v190_v35  ;;  %v197_v38 = vmul.f32 0.2, %v191_v27 }
 0x12d   :  { %v198_v39 = vmul.f32 0.2, %v192_v36 }
 0x12e   :  { %v202_v40 = vmax.f32 %v190_v35, %v196_v37  ;;  %v203_v41 = vmax.f32 %v191_v27, %v197_v38 }
 0x12f   :  { %v204_v42 = vmax.f32 %v192_v36, %v198_v39 }
 0x130   :  { %v207_v43 = vpack.c.bf16 %v203_v41, %v202_v40 }
 0x131   :  { %v208_v44 = vpack.c.bf16 %v204_v42, %v204_v42 }
 0x132   :  { %211 = vst [vmem:[%s359_s4 + $0xc] sm:$0xff] %v207_v43 }
 0x133   :  { %212 = vst [vmem:[%s359_s4 + $0x14] sm:$0xf] %v208_v44 }

// kernel: discriminator_forward.3
= control target key start
LH: loop header
LB: loop body
LE: loop exit
PB: predicated region body
PF: predicated region fallthrough
CT: control target
= control target key end

     0   :  { %vm257_vm0 = vcmask 261120   ;;  %s1057_s20 = smov 96   ;;  %s1058_s23 = smov 64   ;;  %vm421_vm4 = vcmask 523264   ;;  %vm424_vm5 = vcmask 785408   ;;  %s1384_s1 = inlined_call_operand.vmem [shape: bf16[256,32], index: 1, kind: input, shape index: {}]   ;;  %s1385_s0 = inlined_call_operand.vmem [shape: bf16[64,256], index: 0, kind: input, shape index: {}]   ;;  %s1386_s2 = inlined_call_operand.vmem [shape: f32[1,32], index: 2, kind: input, shape index: {}]   ;;  %s1387_s3 = inlined_call_operand.vmem [shape: f32[1,32], index: 3, kind: input, shape index: {}]   ;;  %s1388_s4 = inlined_call_operand.vmem [shape: bf16[512,128], index: 4, kind: input, shape index: {}]   ;;  %s1389_s5 = inlined_call_operand.vmem [shape: f32[1,128], index: 5, kind: input, shape index: {}]   ;;  %s1390_s6 = inlined_call_operand.vmem [shape: f32[2,128], index: 6, kind: output, shape index: {}]  }
   0x1   :  { %v1008_v0 = vld [vmem:[%s1384_s1 + $0x38] sm:$0xff]  ;;  %v1007_v2 = vld [vmem:[%s1384_s1 + $0x30] sm:$0xff]  ;;  %v1006_v4 = vld [vmem:[%s1384_s1 + $0x28] sm:$0xff]  ;;  %s1059_s24 = smov 32  }
   0x2   :  { %v1016_v1 = vld [vmem:[%s1384_s1 + $0x78] sm:$0xff]  ;;  %199 = vmatpush.bf16.msra.mxu0 %v1008_v0  ;;  %v1015_v3 = vld [vmem:[%s1384_s1 + $0x70] sm:$0xff]  ;;  %v1014_v5 = vld [vmem:[%s1384_s1 + $0x68] sm:$0xff] }
   0x3   :  { %228 = vmatpush.bf16.msra.mxu1 %v1016_v1  ;;  %v1005_v6 = vld [vmem:[%s1384_s1 + $0x20] sm:$0xff]  ;;  %v1004_v8 = vld [vmem:[%s1384_s1 + $0x18] sm:$0xff]  ;;  %v1003_v10 = vld [vmem:[%s1384_s1 + $0x10] sm:$0xff] }
   0x4   :  { %v1013_v7 = vld [vmem:[%s1384_s1 + $0x60] sm:$0xff]  ;;  %v1012_v9 = vld [vmem:[%s1384_s1 + $0x58] sm:$0xff]  ;;  %v1011_v11 = vld [vmem:[%s1384_s1 + $0x50] sm:$0xff] }
   0x5   :  { %v1002_v12 = vld [vmem:[%s1384_s1 + $0x8] sm:$0xff]  ;;  %v1001_v14 = vld [vmem:[%s1384_s1] sm:$0xff]  ;;  %v779_v22 = vld [vmem:[%s1385_s0 + $0x10] sm:$0xf] }
   0x6   :  { %200 = vmatpush.bf16.msra.mxu0 %v1007_v2  ;;  %v1010_v13 = vld [vmem:[%s1384_s1 + $0x48] sm:$0xff]  ;;  %v1009_v15 = vld [vmem:[%s1384_s1 + $0x40] sm:$0xff]  ;;  %v996_v23 = vld [vmem:[%s1385_s0 + $0x14] sm:$0xf0] }
   0x7   :  { %229 = vmatpush.bf16.msra.mxu1 %v1015_v3  ;;  %v771_v16 = vld [vmem:[%s1385_s0] sm:$0xf]  ;;  %v994_v17 = vld [vmem:[%s1385_s0 + $0x4] sm:$0xf0]  ;;  %v993_v18 = vld [vmem:[%s1385_s0 + $0x4] sm:$0xf]  ;;  %v780_v26 = vor.u32 %v996_v23, %v779_v22 }
   0x8   :  { %v773_v19 = vld [vmem:[%s1385_s0 + $0x8] sm:$0xf0]  ;;  %v772_v20 = vor.u32 %v994_v17, %v771_v16  ;;  %v995_v24 = vld [vmem:[%s1385_s0 + $0x14] sm:$0xf]  ;;  %v781_v25 = vld [vmem:[%s1385_s0 + $0x18] sm:$0xf0] }
   0x9   :  { %v776_v21 = vor.u32 %v993_v18, %v773_v19  ;;  %v784_v27 = vor.u32 %v995_v24, %v781_v25  ;;  %v787_v28 = vld [vmem:[%s1385_s0 + $0x20] sm:$0xf]  ;;  %v998_v29 = vld [vmem:[%s1385_s0 + $0x24] sm:$0xf0]  ;;  %v997_v30 = vld [vmem:[%s1385_s0 + $0x24] sm:$0xf] }
   0xa   :  { %201 = vmatpush.bf16.msra.mxu0 %v1006_v4  ;;  %v789_v31 = vld [vmem:[%s1385_s0 + $0x28] sm:$0xf0]  ;;  %v788_v32 = vor.u32 %v998_v29, %v787_v28  ;;  %v795_v34 = vld [vmem:[%s1385_s0 + $0x30] sm:$0xf]  ;;  %v1000_v35 = vld [vmem:[%s1385_s0 + $0x34] sm:$0xf0] }
   0xb   :  { %230 = vmatpush.bf16.msra.mxu1 %v1014_v5  ;;  %v792_v33 = vor.u32 %v997_v30, %v789_v31  ;;  %v999_v36 = vld [vmem:[%s1385_s0 + $0x34] sm:$0xf]  ;;  %v797_v37 = vld [vmem:[%s1385_s0 + $0x38] sm:$0xf0]  ;;  %v796_v38 = vor.u32 %v1000_v35, %v795_v34 }
   0xc   :  { %v800_v39 = vor.u32 %v999_v36, %v797_v37 }
   0xe   :  { %202 = vmatpush.bf16.msra.mxu0 %v1005_v6 }
   0xf   :  { %231 = vmatpush.bf16.msra.mxu1 %v1013_v7 }
  0x12   :  { %203 = vmatpush.bf16.msra.mxu0 %v1004_v8 }
  0x13   :  { %232 = vmatpush.bf16.msra.mxu1 %v1012_v9 }
  0x16   :  { %204 = vmatpush.bf16.msra.mxu0 %v1003_v10 }
  0x17   :  { %233 = vmatpush.bf16.msra.mxu1 %v1011_v11 }
  0x1a   :  { %205 = vmatpush.bf16.msra.mxu0 %v1002_v12 }
  0x1b   :  { %234 = vmatpush.bf16.msra.mxu1 %v1010_v13 }
  0x1e   :  { %206 = vmatpush.bf16.msra.mxu0 %v1001_v14 }
  0x1f   :  { %235 = vmatpush.bf16.msra.mxu1 %v1009_v15 }
  0x21   :  { %207 = vmatmul.bf16.vlgmr.msra.gmra.mxu0 %v772_v20 }
  0x22   :  { %236 = vmatmul.bf16.vlgmr.msra.gmra.mxu1 %v776_v21 }
  0x31   :  { %212 = vmatmul.bf16.gmra.mxu0 %v780_v26 }
  0x32   :  { %241 = vmatmul.bf16.gmra.mxu1 %v784_v27 }
  0x41   :  { %217 = vmatmul.bf16.gmra.mxu0 %v788_v32 }
  0x42   :  { %246 = vmatmul.bf16.gmra.mxu1 %v792_v33 }
  0x51   :  { %222 = vmatmul.bf16.gmra.mxu0 %v796_v38 }
  0x52   :  { %251 = vmatmul.bf16.gmra.mxu1 %v800_v39 }
  0x9e   :  { %v208_v40 = vpop.f32.mrf.mxu0 }
  0x9f   :  { %v237_v41 = vpop.f32.mrf.mxu1 }
  0xa0   :  { %v1193_v51 = vadd.f32 %v237_v41, %v208_v40 }
  0xa2   :  { %v280_v57 = vmul.f32 %v1193_v51, %v1193_v51  ;;  %v258_v61 = vsel %vm257_vm0, %v1193_v51, 0.0 }
  0xa4   :  { %v288_v2 = vsel %vm257_vm0, %v280_v57, 0.0 }
  0xa6   :  { %v210_v42 = vpop.f32.mrf.mxu0 }
  0xa7   :  { %v239_v43 = vpop.f32.mrf.mxu1 }
  0xa8   :  { %v1191_v50 = vadd.f32 %v239_v43, %v210_v42 }
  0xaa   :  { %v281_v55 = vmul.f32 %v1191_v50, %v1191_v50  ;;  %v259_v58 = vsel %vm257_vm0, %v1191_v50, 0.0 }
  0xab   :  { %v260_v3 = vadd.f32 %v259_v58, %v258_v61 }
  0xac   :  { %v289_v62 = vsel %vm257_vm0, %v281_v55, 0.0 }
  0xad   :  { %v290_v10 = vadd.f32 %v289_v62, %v288_v2 }
  0xae   :  { %v213_v44 = vpop.f32.mrf.mxu0 }
  0xaf   :  { %v242_v45 = vpop.f32.mrf.mxu1 }
  0xb0   :  { %v1195_v54 = vadd.f32 %v242_v45, %v213_v44 }
  0xb2   :  { %v282_v59 = vmul.f32 %v1195_v54, %v1195_v54  ;;  %v261_v63 = vsel %vm257_vm0, %v1195_v54, 0.0 }
  0xb3   :  { %v262_v11 = vadd.f32 %v261_v63, %v260_v3 }
  0xb4   :  { %v291_v6 = vsel %vm257_vm0, %v282_v59, 0.0 }
  0xb5   :  { %v292_v15 = vadd.f32 %v291_v6, %v290_v10 }
  0xb6   :  { %v215_v46 = vpop.f32.mrf.mxu0 }
  0xb7   :  { %v244_v47 = vpop.f32.mrf.mxu1 }
  0xb8   :  { %v1199_v56 = vadd.f32 %v244_v47, %v215_v46 }
  0xba   :  { %v283_v0 = vmul.f32 %v1199_v56, %v1199_v56  ;;  %v263_v7 = vsel %vm257_vm0, %v1199_v56, 0.0 }
  0xbb   :  { %v264_v16 = vadd.f32 %v263_v7, %v262_v11 }
  0xbc   :  { %v293_v12 = vsel %vm257_vm0, %v283_v0, 0.0 }
  0xbd   :  { %v294_v20 = vadd.f32 %v293_v12, %v292_v15 }
  0xbe   :  { %v218_v48 = vpop.f32.mrf.mxu0 }
  0xbf   :  { %v247_v49 = vpop.f32.mrf.mxu1 }
  0xc0   :  { %v1207_v60 = vadd.f32 %v247_v49, %v218_v48 }
  0xc2   :  { %v284_v8 = vmul.f32 %v1207_v60, %v1207_v60  ;;  %v265_v13 = vsel %vm257_vm0, %v1207_v60, 0.0 }
  0xc3   :  { %v266_v21 = vadd.f32 %v265_v13, %v264_v16 }
  0xc4   :  { %v295_v17 = vsel %vm257_vm0, %v284_v8, 0.0 }
  0xc5   :  { %v296_v25 = vadd.f32 %v295_v17, %v294_v20 }
  0xc6   :  { %v220_v52 = vpop.f32.mrf.mxu0 }
  0xc7   :  { %v249_v53 = vpop.f32.mrf.mxu1 }
  0xc8   :  { %v250_v1 = vadd.f32 %v249_v53, %v220_v52 }
  0xca   :  { %v285_v14 = vmul.f32 %v250_v1, %v250_v1  ;;  %v267_v18 = vsel %vm257_vm0, %v250_v1, 0.0 }
  0xcb   :  { %v268_v24 = vadd.f32 %v267_v18, %v266_v21 }
  0xcc   :  { %v297_v22 = vsel %vm257_vm0, %v285_v14, 0.0 }
  0xcd   :  { %v298_v30 = vadd.f32 %v297_v22, %v296_v25 }
  0xce   :  { %v223_v4 = vpop.f32.mrf.mxu0 }
  0xcf   :  { %v252_v5 = vpop.f32.mrf.mxu1 }
  0xd0   :  { %v253_v9 = vadd.f32 %v252_v5, %v223_v4  ;;  %v1052_v4 = vld [vmem:[%s1386_s2] ss:$0 sm:$0xff] }
  0xd2   :  { %v286_v19 = vmul.f32 %v253_v9, %v253_v9  ;;  %v269_v23 = vsel %vm257_vm0, %v253_v9, 0.0  ;;  %v1053_v9 = vld [vmem:[%s1387_s3] ss:$0 sm:$0xff] }
  0xd3   :  { %v270_v31 = vadd.f32 %v269_v23, %v268_v24 }
  0xd4   :  { %v299_v28 = vsel %vm257_vm0, %v286_v19, 0.0 }
  0xd5   :  { %v300_v34 = vadd.f32 %v299_v28, %v298_v30  ;;  %v1024_v28 = vld [vmem:[%s1388_s4 + $0x38] sm:$0xff] }
  0xd6   :  { %v225_v26 = vpop.f32.mrf.mxu0  ;;  %712 = vmatpush.bf16.msra.mxu2 %v1024_v28 }
  0xd7   :  { %v254_v27 = vpop.f32.mrf.mxu1 }
  0xd8   :  { %v255_v29 = vadd.f32 %v254_v27, %v225_v26 }
  0xda   :  { %v271_v32 = vsel %vm257_vm0, %v255_v29, 0.0  ;;  %v287_v33 = vmul.f32 %v255_v29, %v255_v29  ;;  %v1032_v29 = vld [vmem:[%s1388_s4 + $0x78] sm:$0xff] }
  0xdb   :  { %v272_v35 = vadd.f32 %v271_v32, %v270_v31  ;;  %725 = vmatpush.bf16.msra.mxu3 %v1032_v29 }
  0xdc   :  { %v301_v36 = vsel %vm257_vm0, %v287_v33, 0.0 }
  0xdd   :  { %v273_v37 = vrot.slane %v272_v35, 4  ;;  %v302_v38 = vadd.f32 %v301_v36, %v300_v34  ;;  %v1023_v34 = vld [vmem:[%s1388_s4 + $0x30] sm:$0xff] }
  0xde   :  { %713 = vmatpush.bf16.msra.mxu2 %v1023_v34 }
  0xdf   :  { %v274_v39 = vadd.f32 %v273_v37, %v272_v35  ;;  %v303_v40 = vrot.slane %v302_v38, 4  ;;  %v1031_v35 = vld [vmem:[%s1388_s4 + $0x70] sm:$0xff] }
  0xe0   :  { %726 = vmatpush.bf16.msra.mxu3 %v1031_v35 }
  0xe1   :  { %v275_v41 = vrot.slane %v274_v39, 2  ;;  %v304_v42 = vadd.f32 %v303_v40, %v302_v38 }
  0xe3   :  { %v276_v43 = vadd.f32 %v275_v41, %v274_v39  ;;  %v305_v44 = vrot.slane %v304_v42, 2 }
  0xe5   :  { %v277_v45 = vrot.slane %v276_v43, 1  ;;  %v306_v46 = vadd.f32 %v305_v44, %v304_v42 }
  0xe7   :  { %v278_v47 = vadd.f32 %v277_v45, %v276_v43  ;;  %v307_v48 = vrot.slane %v306_v46, 1  ;;  %v1022_v43 = vld [vmem:[%s1388_s4 + $0x28] sm:$0xff] }
  0xe8   :  { %714 = vmatpush.bf16.msra.mxu2 %v1022_v43 }
  0xe9   :  { %v279_v49 = vmul.f32 0.02, %v278_v47  ;;  %v308_v52 = vadd.f32 %v307_v48, %v306_v46 }
  0xeb   :  { %v309_v53 = vmul.f32 0.02, %v308_v52  ;;  %v310_v55 = vmul.f32 %v279_v49, %v279_v49  ;;  %v315_v3 = vsub.f32 %v1195_v54, %v279_v49  ;;  %v313_v5 = vsub.f32 %v1193_v51, %v279_v49 }
  0xec   :  { %v314_v6 = vsub.f32 %v1191_v50, %v279_v49  ;;  %v316_v12 = vsub.f32 %v1199_v56, %v279_v49  ;;  %v317_v54 = vsub.f32 %v1207_v60, %v279_v49 }
  0xed   :  { %v311_v57 = vsub.f32 %v309_v53, %v310_v55 }
  0xef   :  { %v312_v58 = vmax.f32 %v311_v57, 0.0 }
  0xf1   :  { %v318_v59 = vadd.f32 1e-05, %v312_v58 }
  0xf3   :  { %1055 = vrsqrt.f32 %v318_v59  ;;  %vm325_vm2 = vweird.f32 %v318_v59 }
  0xf9   :  { %v1056_v61 = vpop.eup %1055 }
  0xfa   :  { %v320_v62 = vmul.f32 %v1056_v61, %v318_v59  ;;  %vm326_vm1 = vweird.f32 %v1056_v61 }
  0xfb   :  { %vm327_vm3 = vmor %vm325_vm2, %vm326_vm1 }
  0xfc   :  { %v321_v63 = vmul.f32 %v1056_v61, %v320_v62 }
  0xfe   :  { %v322_v0 = vmul.f32 0.5, %v321_v63 }
 0x100   :  { %v323_v1 = vsub.f32 1.5, %v322_v0 }
 0x102   :  { %v324_v2 = vmul.f32 %v1056_v61, %v323_v1  ;;  %v1030_v1 = vld [vmem:[%s1388_s4 + $0x68] sm:$0xff] }
 0x103   :  { %727 = vmatpush.bf16.msra.mxu3 %v1030_v1 }
 0x104   :  { %v328_v7 = vsel %vm327_vm3, %v1056_v61, %v324_v2  ;;  %v1021_v2 = vld [vmem:[%s1388_s4 + $0x20] sm:$0xff] }
 0x105   :  { %v331_v8 = vmul.f32 %v328_v7, %v315_v3  ;;  %v329_v10 = vmul.f32 %v328_v7, %v313_v5  ;;  %v330_v11 = vmul.f32 %v328_v7, %v314_v6  ;;  %v332_v16 = vmul.f32 %v328_v7, %v316_v12  ;;  %715 = vmatpush.bf16.msra.mxu2 %v1021_v2  ;;  %v1029_v3 = vld [vmem:[%s1388_s4 + $0x60] sm:$0xff]  ;;  %v1028_v5 = vld [vmem:[%s1388_s4 + $0x58] sm:$0xff]  ;;  %v1019_v6 = vld [vmem:[%s1388_s4 + $0x10] sm:$0xff] }
 0x106   :  { %v333_v50 = vmul.f32 %v328_v7, %v317_v54  ;;  %v1027_v7 = vld [vmem:[%s1388_s4 + $0x50] sm:$0xff]  ;;  %v1025_v12 = vld [vmem:[%s1388_s4 + $0x40] sm:$0xff]  ;;  %v1048_v54 = vld [vmem:[%s1388_s4 + $0xf8] sm:$0xff] }
 0x107   :  { %v340_v13 = vmul.f32 %v1052_v4, %v331_v8  ;;  %v338_v14 = vmul.f32 %v1052_v4, %v329_v10  ;;  %v339_v15 = vmul.f32 %v1052_v4, %v330_v11  ;;  %v341_v22 = vmul.f32 %v1052_v4, %v332_v16  ;;  %728 = vmatpush.bf16.msra.mxu3 %v1029_v3  ;;  %v1018_v8 = vld [vmem:[%s1388_s4 + $0x8] sm:$0xff]  ;;  %v1017_v10 = vld [vmem:[%s1388_s4] sm:$0xff]  ;;  %v1040_v11 = vld [vmem:[%s1388_s4 + $0xb8] sm:$0xff] }
 0x108   :  { %v342_v26 = vmul.f32 %v1052_v4, %v333_v50  ;;  %v1020_v4 = vld [vmem:[%s1388_s4 + $0x18] sm:$0xff]  ;;  %v1046_v16 = vld [vmem:[%s1388_s4 + $0xe8] sm:$0xff] }
 0x109   :  { %v349_v17 = vadd.f32 %v1053_v9, %v340_v13  ;;  %v347_v51 = vadd.f32 %v1053_v9, %v338_v14  ;;  %v348_v18 = vadd.f32 %v1053_v9, %v339_v15  ;;  %v350_v60 = vadd.f32 %v1053_v9, %v341_v22  ;;  %716 = vmatpush.bf16.msra.mxu2 %v1020_v4  ;;  %v1039_v13 = vld [vmem:[%s1388_s4 + $0xb0] sm:$0xff]  ;;  %v1038_v15 = vld [vmem:[%s1388_s4 + $0xa8] sm:$0xff]  ;;  %v1044_v50 = vld [vmem:[%s1388_s4 + $0xd8] sm:$0xff] }
 0x10a   :  { %v351_v33 = vadd.f32 %v1053_v9, %v342_v26  ;;  %v1026_v9 = vld [vmem:[%s1388_s4 + $0x48] sm:$0xff]  ;;  %v1047_v14 = vld [vmem:[%s1388_s4 + $0xf0] sm:$0xff] }
 0x10b   :  { %v354_v19 = vmul.f32 0.2, %v349_v17  ;;  %v352_v20 = vmul.f32 0.2, %v347_v51  ;;  %v353_v21 = vmul.f32 0.2, %v348_v18  ;;  %729 = vmatpush.bf16.msra.mxu3 %v1028_v5 }
 0x10c   :  { %v355_v38 = vmul.f32 0.2, %v350_v60  ;;  %v356_v42 = vmul.f32 0.2, %v351_v33  ;;  %v1042_v22 = vld [vmem:[%s1388_s4 + $0xc8] sm:$0xff] }
 0x10d   :  { %v359_v23 = vmax.f32 %v349_v17, %v354_v19  ;;  %v357_v24 = vmax.f32 %v347_v51, %v352_v20  ;;  %v358_v25 = vmax.f32 %v348_v18, %v353_v21  ;;  %717 = vmatpush.bf16.msra.mxu2 %v1019_v6  ;;  %v1037_v17 = vld [vmem:[%s1388_s4 + $0xa0] sm:$0xff]  ;;  %v1036_v18 = vld [vmem:[%s1388_s4 + $0x98] sm:$0xff]  ;;  %v1035_v19 = vld [vmem:[%s1388_s4 + $0x90] sm:$0xff] }
 0x10e   :  { %v360_v44 = vmax.f32 %v350_v60, %v355_v38  ;;  %v361_v46 = vmax.f32 %v351_v33, %v356_v42  ;;  %v1045_v51 = vld [vmem:[%s1388_s4 + $0xe0] sm:$0xff]  ;;  %v1043_v20 = vld [vmem:[%s1388_s4 + $0xd0] sm:$0xff]  ;;  %v1034_v21 = vld [vmem:[%s1388_s4 + $0x88] sm:$0xff] }
 0x10f   :  { %v364_v27 = vpack.c.bf16 %v359_v23, %v359_v23  ;;  %v1243_v56 = vpack.c.bf16 %v357_v24, %v357_v24  ;;  %v363_v32 = vpack.c.bf16 %v358_v25, %v358_v25  ;;  %730 = vmatpush.bf16.msra.mxu3 %v1027_v7  ;;  %v1033_v23 = vld [vmem:[%s1388_s4 + $0x80] sm:$0xff] }
 0x110   :  { %v365_v48 = vpack.c.bf16 %v360_v44, %v360_v44  ;;  %v366_v53 = vpack.c.bf16 %v361_v46, %v361_v46  ;;  %v1041_v25 = vld [vmem:[%s1388_s4 + $0xc0] sm:$0xff] }
 0x111   :  { %v390_v30 = vunpack.c.l.b16 %v364_v27  ;;  %v368_v31 = vunpack.c.l.b16 %v1243_v56  ;;  %v380_v41 = vunpack.c.l.b16 %v363_v32  ;;  %718 = vmatpush.bf16.msra.mxu2 %v1018_v8 }
 0x112   :  { %v399_v55 = vunpack.c.l.b16 %v365_v48  ;;  %v408_v57 = vunpack.c.l.b16 %v366_v53 }
 0x113   :  { %v1258_v36 = vpack.c.b16 %v390_v30, %v390_v30  ;;  %v369_v37 = vpack.c.b16 %v368_v31, %v368_v31  ;;  %v1266_v45 = vpack.c.b16 %v380_v41, %v380_v41  ;;  %731 = vmatpush.bf16.msra.mxu3 %v1026_v9 }
 0x114   :  { %v1272_v58 = vpack.c.b16 %v399_v55, %v399_v55  ;;  %v409_v59 = vpack.c.b16 %v408_v57, %v408_v57  ;;  %v1054_v57 = vld [vmem:[%s1389_s5] ss:$0 sm:$0xff] }
 0x115   :  { %392 = vrot.lane.b32.xlu2 %v1258_v36, %s1057_s20  ;;  %v373_v39 = vrot.slane %v369_v37, 2  ;;  %v370_v40 = vrot.slane %v369_v37, 1  ;;  %v376_v47 = vrot.slane %v369_v37, 3  ;;  %v386_v49 = vrot.slane %v1266_v45, 3  ;;  %719 = vmatpush.bf16.msra.mxu2 %v1017_v10 }
 0x116   :  { %v383_v52 = vrot.slane %v1266_v45, 2  ;;  %v395_v61 = vrot.slane %v1258_v36, 3  ;;  %v415_v62 = vrot.slane %v409_v59, 2  ;;  %v403_v63 = vrot.slane %v1272_v58, 1 }
 0x117   :  { %374 = vrot.lane.b32.xlu1 %v373_v39, %s1058_s23  ;;  %371 = vrot.lane.b32.xlu0 %v370_v40, %s1059_s24  ;;  %v412_v0 = vrot.slane %v409_v59, 1  ;;  %v382_v31 = vrot.slane %v1266_v45, 1  ;;  %v394_v40 = vrot.slane %v1258_v36, 2  ;;  %v406_v42 = vrot.slane %v1272_v58, 3 }
 0x118   :  { %732 = vmatpush.bf16.msra.mxu3 %v1025_v12 }
 0x119   :  { %738 = vmatpush.bf16.msrb.mxu2 %v1040_v11 }
 0x11c   :  { %751 = vmatpush.bf16.msrb.mxu3 %v1048_v54 }
 0x11d   :  { %377 = vrot.lane.b32.xlu2 %v376_v47, %s1057_s20  ;;  %739 = vmatpush.bf16.msrb.mxu2 %v1039_v13 }
 0x11f   :  { %387 = vrot.lane.b32.xlu1 %v386_v49, %s1058_s23  ;;  %384 = vrot.lane.b32.xlu0 %v383_v52, %s1059_s24 }
 0x120   :  { %752 = vmatpush.bf16.msrb.mxu3 %v1047_v14 }
 0x121   :  { %740 = vmatpush.bf16.msrb.mxu2 %v1038_v15 }
 0x124   :  { %753 = vmatpush.bf16.msrb.mxu3 %v1046_v16 }
 0x125   :  { %401 = vrot.lane.b32.xlu2 %v1272_v58, %s1058_s23  ;;  %741 = vmatpush.bf16.msrb.mxu2 %v1037_v17 }
 0x127   :  { %410 = vrot.lane.b32.xlu1 %v409_v59, %s1059_s24  ;;  %396 = vrot.lane.b32.xlu0 %v395_v61, %s1059_s24 }
 0x128   :  { %754 = vmatpush.bf16.msrb.mxu3 %v1045_v51 }
 0x129   :  { %742 = vmatpush.bf16.msrb.mxu2 %v1036_v18 }
 0x12c   :  { %755 = vmatpush.bf16.msrb.mxu3 %v1044_v50 }
 0x12d   :  { %416 = vrot.lane.b32.xlu2 %v415_v62, %s1057_s20  ;;  %743 = vmatpush.bf16.msrb.mxu2 %v1035_v19 }
 0x12f   :  { %404 = vrot.lane.b32.xlu1 %v403_v63, %s1057_s20  ;;  %413 = vrot.lane.b32.xlu0 %v412_v0, %s1058_s23 }
 0x130   :  { %756 = vmatpush.bf16.msrb.mxu3 %v1043_v20 }
 0x131   :  { %744 = vmatpush.bf16.msrb.mxu2 %v1034_v21 }
 0x134   :  { %757 = vmatpush.bf16.msrb.mxu3 %v1042_v22 }
 0x135   :  { %745 = vmatpush.bf16.msrb.mxu2 %v1033_v23 }
 0x138   :  { %758 = vmatpush.bf16.msrb.mxu3 %v1041_v25 }
 0x16f   :  { %v393_v24 = vpop.permute.xlu2 %392 }
 0x177   :  { %v378_v28 = vpop.permute.xlu2 %377 }
 0x17f   :  { %v402_v38 = vpop.permute.xlu2 %401 }
 0x187   :  { %v417_v47 = vpop.permute.xlu2 %416 }
 0x189   :  { %v375_v26 = vpop.permute.xlu1 %374  ;;  %v372_v27 = vpop.permute.xlu0 %371 }
 0x18a   :  { %v420_v60 = vsel %vm257_vm0, %v1243_v56, %v372_v27 }
 0x18b   :  { %v423_v29 = vsel %vm421_vm4, %v420_v60, %v375_v26 }
 0x18c   :  { %v426_v30 = vsel %vm424_vm5, %v423_v29, %v378_v28 }
 0x18d   :  { %720 = vmatmul.bf16.vlgmr.msra.gmra.mxu2 %v426_v30 }
 0x191   :  { %v388_v32 = vpop.permute.xlu1 %387  ;;  %v385_v33 = vpop.permute.xlu0 %384 }
 0x192   :  { %v430_v34 = vsel %vm257_vm0, %v382_v31, %v385_v33 }
 0x193   :  { %v432_v35 = vsel %vm421_vm4, %v430_v34, %v388_v32 }
 0x194   :  { %v434_v37 = vsel %vm424_vm5, %v432_v35, %v393_v24 }
 0x195   :  { %733 = vmatmul.bf16.vlgmr.msra.gmra.mxu3 %v434_v37 }
 0x199   :  { %v411_v39 = vpop.permute.xlu1 %410  ;;  %v397_v56 = vpop.permute.xlu0 %396 }
 0x19a   :  { %v438_v41 = vsel %vm257_vm0, %v394_v40, %v397_v56  ;;  %v446_v43 = vsel %vm257_vm0, %v406_v42, %v411_v39 }
 0x19b   :  { %v440_v46 = vsel %vm421_vm4, %v438_v41, %v402_v38 }
 0x1a1   :  { %v405_v44 = vpop.permute.xlu1 %404  ;;  %v414_v45 = vpop.permute.xlu0 %413 }
 0x1a2   :  { %v448_v48 = vsel %vm421_vm4, %v446_v43, %v414_v45  ;;  %v442_v49 = vsel %vm424_vm5, %v440_v46, %v405_v44 }
 0x1a3   :  { %746 = vmatmul.bf16.vlgmr.msrb.gmra.mxu2 %v442_v49  ;;  %v450_v52 = vsel %vm424_vm5, %v448_v48, %v417_v47 }
 0x1a5   :  { %759 = vmatmul.bf16.vlgmr.msrb.gmra.mxu3 %v450_v52 }
 0x210   :  { %v721_v36 = vpop.f32.mrf.mxu2 }
 0x211   :  { %v722_v59 = vadd.f32 %v1054_v57, %v721_v36 }
 0x218   :  { %v723_v53 = vpop.f32.mrf.mxu2  ;;  %v734_v55 = vpop.f32.mrf.mxu3 }
 0x219   :  { %v735_v61 = vadd.f32 %v734_v55, %v722_v59 }
 0x220   :  { %v736_v58 = vpop.f32.mrf.mxu3 }
 0x226   :  { %v747_v62 = vpop.f32.mrf.mxu2 }
 0x227   :  { %v748_v63 = vadd.f32 %v747_v62, %v735_v61 }
 0x228   :  { %v760_v0 = vpop.f32.mrf.mxu3 }
 0x229   :  { %v761_v1 = vadd.f32 %v760_v0, %v748_v63 }
 0x22b   :  { %764 = vst [vmem:[%s1390_s6] sm:$0x3] %v761_v1 }
 0x22e   :  { %v749_v2 = vpop.f32.mrf.mxu2 }
 0x230   :  { %v762_v3 = vpop.f32.mrf.mxu3 }

</bundles_post_ra>
